<compile_context>
chip_gen: v7x
topology: tpu7x:2x2x1
jax: 0.10.0
libtpu: 0.0.40
codegen_flags: <defaults>
</compile_context>

<pallas_src>
import jax
import jax.numpy as jnp
from jax import lax
from jax.experimental import pallas as pl
from jax.experimental.pallas import tpu as pltpu


def _vmem_budget_bytes():
    """Scoped-VMEM limit: ~75% of physical VMEM, capped at 100 MiB."""
    try:
        cap = pltpu.get_tpu_info().vmem_capacity_bytes
    except Exception:  # noqa: BLE001 - fall back to a safe cross-generation value
        cap = 64 * 1024 * 1024
    return min(int(cap) * 3 // 4, 100 * 1024 * 1024)


def _pick_tile(n, itemsize, vmem_bytes):
    """Largest 128-multiple tile <= target that divides n (8-multiple fallback)."""
    target = 512
    if vmem_bytes >= 90 * 1024 * 1024 and itemsize <= 2:
        target = 1024          # bf16 features on 128 MiB-VMEM chips: cut text re-streaming
    if n <= target:
        return n
    t = (target // 128) * 128
    while t >= 128:
        if n % t == 0:
            return t
        t -= 128
    t = (target // 8) * 8
    while t >= 8:
        if n % t == 0:
            return t
        t -= 8
    return n


def _clip_loss_kernel(scale_ref, img_ref, txt_ref,
                      part_ref, mcol_ref, lcol_ref, m_r, l_r):
    i = pl.program_id(0)            # row tile (parallel)
    j = pl.program_id(1)            # column tile (sequential reduction sweep)
    nj = pl.num_programs(1)

    # ---- start of a new row-tile sweep --------------------------------------
    @pl.when(j == 0)
    def _():
        part_ref[...] = jnp.zeros_like(part_ref)
        m_r[...] = jnp.full_like(m_r, -jnp.inf)
        l_r[...] = jnp.zeros_like(l_r)

    # ---- (tq, tk) logits tile: img @ txt.T on the MXU, f32 accumulation -----
    logits = lax.dot_general(
        img_ref[...], txt_ref[...],
        dimension_numbers=(((1,), (1,)), ((), ())),
        preferred_element_type=jnp.float32)
    # Apply logit_scale to the f32 logits (cheaper than scaling the (tq, d)
    # image tile every inner step, and avoids bf16 pre-rounding).
    logits = logits * scale_ref[0, 0]
    tq, tk = logits.shape

    # ---- online row LSE (cross-entropy over logits_per_image rows) ----------
    m_prev = m_r[...]
    m_new = jnp.maximum(m_prev, jnp.max(logits, axis=1, keepdims=True))
    l_r[...] = (jnp.exp(m_prev - m_new) * l_r[...]
                + jnp.sum(jnp.exp(logits - m_new), axis=1, keepdims=True))
    m_r[...] = m_new

    # ---- per-(row-tile, col-tile) column softmax stats -----------------------
    # Each column tile is visited once per row sweep, so single-tile max /
    # sum-exp is exact here; the cross-row-tile merge happens in a small JAX
    # epilogue.  Lane-dense (1, tk) stores into per-step output blocks.
    c_max = jnp.max(logits, axis=0, keepdims=True)                  # (1, tk)
    c_sum = jnp.sum(jnp.exp(logits - c_max), axis=0, keepdims=True)  # (1, tk)
    mcol_ref[0, 0, :, :] = c_max
    lcol_ref[0, 0, :, :] = c_sum

    # ---- diagonal (labels == arange): read it off the scaled logits tile -----
    @pl.when(i == j)
    def _():
        rows = lax.broadcasted_iota(jnp.int32, (tq, tk), 0)
        cols = lax.broadcasted_iota(jnp.int32, (tq, tk), 1)
        diag_sum = jnp.sum(jnp.where(rows == cols, logits, 0.0))
        part_ref[...] = part_ref[...] - 2.0 * diag_sum

    # ---- finalize this row tile: add its summed row LSEs ---------------------
    @pl.when(j == nj - 1)
    def _():
        lse_r = m_r[...] + jnp.log(l_r[...])                         # (tq, 1)
        part_ref[...] = part_ref[...] + jnp.sum(lse_r)


def clip_loss(image_features, text_features, logit_scale, *, block=None):
    """Pallas implementation of ClipLoss.forward (world_size=1, re_labels=None)."""
    # TODO(synk): world_size > 1 gather_features / local-label-offset branch is
    # distributed glue (cross-device all_gather), not kernel math; only the
    # single-device path is implemented here.
    n, d = image_features.shape
    assert text_features.shape == (n, d)

    vmem_bytes = _vmem_budget_bytes()
    itemsize = jnp.dtype(image_features.dtype).itemsize
    tq = block if block is not None else _pick_tile(n, itemsize, vmem_bytes)
    # TODO(synk): ragged batches (n % tile != 0) would need a padded/masked tail
    # tile; not needed for the shapes exercised here.
    assert n % tq == 0, "tile size must divide the batch"
    tk = tq                        # square tiles -> diagonal lives in blocks i == j
    ni, nj = n // tq, n // tk

    scale = jnp.asarray(logit_scale, jnp.float32).reshape(1, 1)

    txt_spec_kwargs = {}
    if nj >= 3:
        # The text tile changes every inner step; triple-buffer its DMA.
        txt_spec_kwargs["pipeline_mode"] = pl.Buffered(3)

    cost = pl.CostEstimate(
        flops=2 * n * n * d,
        transcendentals=2 * n * n,
        bytes_accessed=int((1 + ni) * n * d * itemsize + ni * (2 * n + 1) * 4 + 4))

    part, m_col, l_col = pl.pallas_call(
        _clip_loss_kernel,
        out_shape=(
            jax.ShapeDtypeStruct((ni, 1, 1), jnp.float32),       # sum(lse_r) - 2*sum(diag), per row tile
            jax.ShapeDtypeStruct((ni, nj, 1, tk), jnp.float32),  # per-tile column max
            jax.ShapeDtypeStruct((ni, nj, 1, tk), jnp.float32),  # per-tile column sum-exp
        ),
        grid=(ni, nj),
        in_specs=[
            pl.BlockSpec(memory_space=pltpu.MemorySpace.SMEM),               # logit_scale
            pl.BlockSpec((tq, d), lambda i, j: (i, 0)),                      # image row tile
            pl.BlockSpec((tk, d), lambda i, j: (j, 0), **txt_spec_kwargs),   # text col tile
        ],
        out_specs=(
            pl.BlockSpec((1, 1, 1), lambda i, j: (i, 0, 0)),
            pl.BlockSpec((1, 1, 1, tk), lambda i, j: (i, j, 0, 0)),
            pl.BlockSpec((1, 1, 1, tk), lambda i, j: (i, j, 0, 0)),
        ),
        scratch_shapes=[
            pltpu.VMEM((tq, 1), jnp.float32),   # m_r (row running max)
            pltpu.VMEM((tq, 1), jnp.float32),   # l_r (row running sum-exp)
        ],
        # Row axis is now truly independent (per-row-tile outputs, per-sweep
        # scratch reset) -> "parallel" lets v7x's two TensorCores split it.
        compiler_params=pltpu.CompilerParams(
            dimension_semantics=("parallel", "arbitrary"),
            vmem_limit_bytes=vmem_bytes),
        cost_estimate=cost,
    )(scale, image_features, text_features)

    # O(ni * n) epilogue: merge per-row-tile column stats into full column LSEs.
    m_col = m_col.reshape(ni, n)
    l_col = l_col.reshape(ni, n)
    m_tot = jnp.max(m_col, axis=0)                                   # (n,)
    l_tot = jnp.sum(l_col * jnp.exp(m_col - m_tot[None, :]), axis=0)
    sum_lse_c = jnp.sum(m_tot + jnp.log(l_tot))
    # loss = 0.5*((sum lse_r - sum diag)/n + (sum lse_c - sum diag)/n)
    return (jnp.sum(part) + sum_lse_c) / jnp.float32(2 * n)


def clip_loss_ref(image_features, text_features, logit_scale):
    """Pure-JAX reference mirroring the PyTorch module (world_size=1)."""
    logits_per_image = logit_scale * image_features @ text_features.T
    logits_per_text = logit_scale * text_features @ image_features.T
    n = logits_per_image.shape[0]
    labels = jnp.arange(n)

    def ce(logits):
        lse = jax.nn.logsumexp(logits, axis=1)
        tgt = logits[jnp.arange(n), labels]
        return jnp.mean(lse - tgt)

    return 0.5 * (ce(logits_per_image) + ce(logits_per_text))


if __name__ == "__main__":
    key = jax.random.PRNGKey(0)
    k1, k2, k3, k4, k5, k6 = jax.random.split(key, 6)

    # Test 1: single-block path (batch 8, embed dim 32) — same as the module demo.
    n1, d1 = 8, 32
    img1 = jax.random.normal(k1, (n1, d1), dtype=jnp.float32)
    txt1 = jax.random.normal(k2, (n1, d1), dtype=jnp.float32)
    scale1 = jnp.float32(2.5)
    out1 = clip_loss(img1, txt1, scale1)
    jax.block_until_ready(out1)
    ref1 = clip_loss_ref(img1, txt1, scale1)
    assert jnp.allclose(out1, ref1, atol=1e-3, rtol=1e-3), (out1, ref1)

    # Test 2: tiled path with 4x4 grid of 8x8 tiles (exercises Buffered(3) and
    # the online row-LSE / column-stat merge).
    n2, d2 = 32, 32
    img2 = jax.random.normal(k3, (n2, d2), dtype=jnp.float32)
    txt2 = jax.random.normal(k4, (n2, d2), dtype=jnp.float32)
    scale2 = jnp.float32(1.5)
    out2 = clip_loss(img2, txt2, scale2, block=8)
    jax.block_until_ready(out2)
    ref2 = clip_loss_ref(img2, txt2, scale2)
    assert jnp.allclose(out2, ref2, atol=1e-3, rtol=1e-3), (out2, ref2)

    # Test 3: 128-aligned lane-dense tiles (2x2 grid of 128x128 logit tiles).
    n3, d3 = 256, 64
    img3 = jax.random.normal(k5, (n3, d3), dtype=jnp.float32)
    txt3 = jax.random.normal(k6, (n3, d3), dtype=jnp.float32)
    scale3 = jnp.float32(3.0)
    out3 = clip_loss(img3, txt3, scale3, block=128)
    jax.block_until_ready(out3)
    ref3 = clip_loss_ref(img3, txt3, scale3)
    assert jnp.allclose(out3, ref3, atol=1e-3, rtol=1e-3), (out3, ref3)

    print("KERNEL_OK")
</pallas_src>

<mosaic_0001>
module attributes {stable_mosaic.version = 11 : i64} {
  func.func @_clip_loss_kernel(%arg0: i32, %arg1: i32, %arg2: memref<1x1xf32, #tpu.memory_space<smem>>, %arg3: memref<8x32xf32, #tpu.memory_space<vmem>>, %arg4: memref<8x32xf32, #tpu.memory_space<vmem>>, %arg5: memref<1x1x1xf32, #tpu.memory_space<vmem>>, %arg6: memref<1x1x1x8xf32, #tpu.memory_space<vmem>>, %arg7: memref<1x1x1x8xf32, #tpu.memory_space<vmem>>, %arg8: memref<8x1xf32, #tpu.memory_space<vmem>>, %arg9: memref<8x1xf32, #tpu.memory_space<vmem>>) attributes {dimension_semantics = [#tpu.dimension_semantics<parallel>, #tpu.dimension_semantics<arbitrary>], iteration_bounds = array<i64: 1, 1>, scalar_prefetch = 0 : i64, scratch_operands = 2 : i64, tpu.core_type = #tpu.core_type<tc>, window_params = [{transform_indices = @transform_0, window_bounds = array<i64: 1, 1>}, {transform_indices = @transform_1, window_bounds = array<i64: 8, 32>}, {transform_indices = @transform_2, window_bounds = array<i64: 8, 32>}, {transform_indices = @transform_3, window_bounds = array<i64: 1, 1, 1>}, {transform_indices = @transform_4, window_bounds = array<i64: 1, 1, 1, 8>}, {transform_indices = @transform_5, window_bounds = array<i64: 1, 1, 1, 8>}]} {
    %c0_i32 = arith.constant 0 : i32
    %0 = arith.cmpi eq, %arg1, %c0_i32 : i32
    %1 = arith.extui %0 : i1 to i32
    %c0_i32_0 = arith.constant 0 : i32
    %2 = arith.cmpi ne, %1, %c0_i32_0 : i32
    scf.if %2 {
      %cst_29 = arith.constant 0.000000e+00 : f32
      %44 = vector.broadcast %cst_29 : f32 to vector<1x1x1xf32>
      %c0_30 = arith.constant 0 : index
      %c0_31 = arith.constant 0 : index
      %c0_32 = arith.constant 0 : index
      %45 = vector.load %arg5[%c0_30, %c0_31, %c0_32] : memref<1x1x1xf32, #tpu.memory_space<vmem>>, vector<1x1x1xf32>
      tpu.vector_store %arg5[%c0_30, %c0_31, %c0_32], %44 {strides = array<i32>} : memref<1x1x1xf32, #tpu.memory_space<vmem>>, vector<1x1x1xf32>,
      %cst_33 = arith.constant 0xFF800000 : f32
      %46 = vector.broadcast %cst_33 : f32 to vector<8x1xf32>
      %c0_34 = arith.constant 0 : index
      %c0_35 = arith.constant 0 : index
      %47 = vector.load %arg8[%c0_34, %c0_35] : memref<8x1xf32, #tpu.memory_space<vmem>>, vector<8x1xf32>
      tpu.vector_store %arg8[%c0_34, %c0_35], %46 {strides = array<i32>} : memref<8x1xf32, #tpu.memory_space<vmem>>, vector<8x1xf32>,
      %cst_36 = arith.constant 0.000000e+00 : f32
      %48 = vector.broadcast %cst_36 : f32 to vector<8x1xf32>
      %c0_37 = arith.constant 0 : index
      %c0_38 = arith.constant 0 : index
      %49 = vector.load %arg9[%c0_37, %c0_38] : memref<8x1xf32, #tpu.memory_space<vmem>>, vector<8x1xf32>
      tpu.vector_store %arg9[%c0_37, %c0_38], %48 {strides = array<i32>} : memref<8x1xf32, #tpu.memory_space<vmem>>, vector<8x1xf32>,
    } else {
    }
    %c0 = arith.constant 0 : index
    %c0_1 = arith.constant 0 : index
    %3 = vector.load %arg3[%c0, %c0_1] : memref<8x32xf32, #tpu.memory_space<vmem>>, vector<8x32xf32>
    %c0_2 = arith.constant 0 : index
    %c0_3 = arith.constant 0 : index
    %4 = vector.load %arg4[%c0_2, %c0_3] : memref<8x32xf32, #tpu.memory_space<vmem>>, vector<8x32xf32>
    %cst = arith.constant dense<0.000000e+00> : vector<8x8xf32>
    %5 = tpu.matmul %3, %4, %cst {dimension_numbers = #tpu.dot_dimension_numbers<[1], [1], [0], [0], [0, 0, 1, 0], [], []>} : vector<8x32xf32>, vector<8x32xf32>, vector<8x8xf32> -> vector<8x8xf32>
    %c0_4 = arith.constant 0 : index
    %c0_5 = arith.constant 0 : index
    %6 = memref.load %arg2[%c0_4, %c0_5] : memref<1x1xf32, #tpu.memory_space<smem>>
    %7 = vector.broadcast %6 : f32 to vector<8x8xf32>
    %8 = arith.mulf %5, %7 : vector<8x8xf32>
    %c0_6 = arith.constant 0 : index
    %c0_7 = arith.constant 0 : index
    %9 = vector.load %arg8[%c0_6, %c0_7] : memref<8x1xf32, #tpu.memory_space<vmem>>, vector<8x1xf32>
    %cst_8 = arith.constant dense<0xFF800000> : vector<8xf32>
    %10 = vector.multi_reduction <maximumf>, %8, %cst_8 [1] : vector<8x8xf32> to vector<8xf32>
    %11 = vector.shape_cast %10 : vector<8xf32> to vector<8x1xf32>
    %12 = arith.maximumf %9, %11 : vector<8x1xf32>
    %13 = arith.subf %9, %12 : vector<8x1xf32>
    %14 = math.exp %13 : vector<8x1xf32>
    %c0_9 = arith.constant 0 : index
    %c0_10 = arith.constant 0 : index
    %15 = vector.load %arg9[%c0_9, %c0_10] : memref<8x1xf32, #tpu.memory_space<vmem>>, vector<8x1xf32>
    %16 = arith.mulf %14, %15 : vector<8x1xf32>
    %17 = vector.broadcast %12 : vector<8x1xf32> to vector<8x8xf32>
    %18 = arith.subf %8, %17 : vector<8x8xf32>
    %19 = math.exp %18 : vector<8x8xf32>
    %cst_11 = arith.constant dense<0.000000e+00> : vector<8xf32>
    %20 = vector.multi_reduction <add>, %19, %cst_11 [1] : vector<8x8xf32> to vector<8xf32>
    %21 = vector.shape_cast %20 : vector<8xf32> to vector<8x1xf32>
    %22 = arith.addf %16, %21 : vector<8x1xf32>
    %c0_12 = arith.constant 0 : index
    %c0_13 = arith.constant 0 : index
    %23 = vector.load %arg9[%c0_12, %c0_13] : memref<8x1xf32, #tpu.memory_space<vmem>>, vector<8x1xf32>
    tpu.vector_store %arg9[%c0_12, %c0_13], %22 {strides = array<i32>} : memref<8x1xf32, #tpu.memory_space<vmem>>, vector<8x1xf32>,
    %c0_14 = arith.constant 0 : index
    %c0_15 = arith.constant 0 : index
    %24 = vector.load %arg8[%c0_14, %c0_15] : memref<8x1xf32, #tpu.memory_space<vmem>>, vector<8x1xf32>
    tpu.vector_store %arg8[%c0_14, %c0_15], %12 {strides = array<i32>} : memref<8x1xf32, #tpu.memory_space<vmem>>, vector<8x1xf32>,
    %cst_16 = arith.constant dense<0xFF800000> : vector<8xf32>
    %25 = vector.multi_reduction <maximumf>, %8, %cst_16 [0] : vector<8x8xf32> to vector<8xf32>
    %26 = vector.shape_cast %25 : vector<8xf32> to vector<1x8xf32>
    %27 = vector.broadcast %26 : vector<1x8xf32> to vector<8x8xf32>
    %28 = arith.subf %8, %27 : vector<8x8xf32>
    %29 = math.exp %28 : vector<8x8xf32>
    %cst_17 = arith.constant dense<0.000000e+00> : vector<8xf32>
    %30 = vector.multi_reduction <add>, %29, %cst_17 [0] : vector<8x8xf32> to vector<8xf32>
    %31 = vector.shape_cast %30 : vector<8xf32> to vector<1x8xf32>
    %c0_18 = arith.constant 0 : index
    %c0_19 = arith.constant 0 : index
    %c0_20 = arith.constant 0 : index
    %c0_21 = arith.constant 0 : index
    %32 = vector.load %arg6[%c0_18, %c0_19, %c0_20, %c0_21] : memref<1x1x1x8xf32, #tpu.memory_space<vmem>>, vector<1x1x1x8xf32>
    %33 = vector.shape_cast %32 : vector<1x1x1x8xf32> to vector<1x8xf32>
    %34 = vector.shape_cast %26 : vector<1x8xf32> to vector<1x1x1x8xf32>
    tpu.vector_store %arg6[%c0_18, %c0_19, %c0_20, %c0_21], %34 {strides = array<i32>} : memref<1x1x1x8xf32, #tpu.memory_space<vmem>>, vector<1x1x1x8xf32>,
    %c0_22 = arith.constant 0 : index
    %c0_23 = arith.constant 0 : index
    %c0_24 = arith.constant 0 : index
    %c0_25 = arith.constant 0 : index
    %35 = vector.load %arg7[%c0_22, %c0_23, %c0_24, %c0_25] : memref<1x1x1x8xf32, #tpu.memory_space<vmem>>, vector<1x1x1x8xf32>
    %36 = vector.shape_cast %35 : vector<1x1x1x8xf32> to vector<1x8xf32>
    %37 = vector.shape_cast %31 : vector<1x8xf32> to vector<1x1x1x8xf32>
    tpu.vector_store %arg7[%c0_22, %c0_23, %c0_24, %c0_25], %37 {strides = array<i32>} : memref<1x1x1x8xf32, #tpu.memory_space<vmem>>, vector<1x1x1x8xf32>,
    %38 = arith.cmpi eq, %arg0, %arg1 : i32
    %39 = arith.extui %38 : i1 to i32
    %c0_i32_26 = arith.constant 0 : i32
    %40 = arith.cmpi ne, %39, %c0_i32_26 : i32
    scf.if %40 {
      %44 = tpu.iota {dimensions = array<i32: 0>} : vector<8x8xi32>
      %45 = tpu.iota {dimensions = array<i32: 1>} : vector<8x8xi32>
      %46 = arith.cmpi eq, %44, %45 : vector<8x8xi32>
      %cst_29 = arith.constant 0.000000e+00 : f32
      %47 = vector.broadcast %cst_29 : f32 to vector<8x8xf32>
      %48 = arith.select %46, %8, %47 : vector<8x8xi1>, vector<8x8xf32>
      %49 = vector.shape_cast %48 : vector<8x8xf32> to vector<1x8x8xf32>
      %cst_30 = arith.constant dense<0.000000e+00> : vector<1xf32>
      %50 = vector.multi_reduction <add>, %49, %cst_30 [1, 2] : vector<1x8x8xf32> to vector<1xf32>
      %51 = vector.shape_cast %50 : vector<1xf32> to vector<1x1x1xf32>
      %52 = vector.extract %51[0, 0, 0] : f32 from vector<1x1x1xf32>
      %c0_31 = arith.constant 0 : index
      %c0_32 = arith.constant 0 : index
      %c0_33 = arith.constant 0 : index
      %53 = vector.load %arg5[%c0_31, %c0_32, %c0_33] : memref<1x1x1xf32, #tpu.memory_space<vmem>>, vector<1x1x1xf32>
      %cst_34 = arith.constant 2.000000e+00 : f32
      %54 = arith.mulf %cst_34, %52 : f32
      %55 = vector.broadcast %54 : f32 to vector<1x1x1xf32>
      %56 = arith.subf %53, %55 : vector<1x1x1xf32>
      %c0_35 = arith.constant 0 : index
      %c0_36 = arith.constant 0 : index
      %c0_37 = arith.constant 0 : index
      %57 = vector.load %arg5[%c0_35, %c0_36, %c0_37] : memref<1x1x1xf32, #tpu.memory_space<vmem>>, vector<1x1x1xf32>
      tpu.vector_store %arg5[%c0_35, %c0_36, %c0_37], %56 {strides = array<i32>} : memref<1x1x1xf32, #tpu.memory_space<vmem>>, vector<1x1x1xf32>,
    } else {
    }
    %c0_i32_27 = arith.constant 0 : i32
    %41 = arith.cmpi eq, %arg1, %c0_i32_27 : i32
    %42 = arith.extui %41 : i1 to i32
    %c0_i32_28 = arith.constant 0 : i32
    %43 = arith.cmpi ne, %42, %c0_i32_28 : i32
    scf.if %43 {
      %c0_29 = arith.constant 0 : index
      %c0_30 = arith.constant 0 : index
      %44 = vector.load %arg8[%c0_29, %c0_30] : memref<8x1xf32, #tpu.memory_space<vmem>>, vector<8x1xf32>
      %c0_31 = arith.constant 0 : index
      %c0_32 = arith.constant 0 : index
      %45 = vector.load %arg9[%c0_31, %c0_32] : memref<8x1xf32, #tpu.memory_space<vmem>>, vector<8x1xf32>
      %46 = math.log %45 : vector<8x1xf32>
      %47 = arith.addf %44, %46 : vector<8x1xf32>
      %c0_33 = arith.constant 0 : index
      %c0_34 = arith.constant 0 : index
      %c0_35 = arith.constant 0 : index
      %48 = vector.load %arg5[%c0_33, %c0_34, %c0_35] : memref<1x1x1xf32, #tpu.memory_space<vmem>>, vector<1x1x1xf32>
      %49 = vector.shape_cast %47 : vector<8x1xf32> to vector<1x8x1xf32>
      %cst_36 = arith.constant dense<0.000000e+00> : vector<1xf32>
      %50 = vector.multi_reduction <add>, %49, %cst_36 [1, 2] : vector<1x8x1xf32> to vector<1xf32>
      %51 = vector.shape_cast %50 : vector<1xf32> to vector<1x1x1xf32>
      %52 = vector.extract %51[0, 0, 0] : f32 from vector<1x1x1xf32>
      %53 = vector.broadcast %52 : f32 to vector<1x1x1xf32>
      %54 = arith.addf %48, %53 : vector<1x1x1xf32>
      %c0_37 = arith.constant 0 : index
      %c0_38 = arith.constant 0 : index
      %c0_39 = arith.constant 0 : index
      %55 = vector.load %arg5[%c0_37, %c0_38, %c0_39] : memref<1x1x1xf32, #tpu.memory_space<vmem>>, vector<1x1x1xf32>
      tpu.vector_store %arg5[%c0_37, %c0_38, %c0_39], %54 {strides = array<i32>} : memref<1x1x1xf32, #tpu.memory_space<vmem>>, vector<1x1x1xf32>,
    } else {
    }
    return
  }
  func.func @transform_0(%arg0: i32, %arg1: i32) -> (i32, i32) {
    %c0_i32 = arith.constant 0 : i32
    %c0_i32_0 = arith.constant 0 : i32
    %c0_i32_1 = arith.constant 0 : i32
    return %c0_i32, %c0_i32_0 : i32, i32
  }
  func.func @transform_1(%arg0: i32, %arg1: i32) -> (i32, i32) {
    %c0_i32 = arith.constant 0 : i32
    %c0_i32_0 = arith.constant 0 : i32
    return %arg0, %c0_i32 : i32, i32
  }
  func.func @transform_2(%arg0: i32, %arg1: i32) -> (i32, i32) {
    %c0_i32 = arith.constant 0 : i32
    %c0_i32_0 = arith.constant 0 : i32
    return %arg1, %c0_i32 : i32, i32
  }
  func.func @transform_3(%arg0: i32, %arg1: i32) -> (i32, i32, i32) {
    %c0_i32 = arith.constant 0 : i32
    %c0_i32_0 = arith.constant 0 : i32
    %c0_i32_1 = arith.constant 0 : i32
    return %arg0, %c0_i32, %c0_i32_0 : i32, i32, i32
  }
  func.func @transform_4(%arg0: i32, %arg1: i32) -> (i32, i32, i32, i32) {
    %c0_i32 = arith.constant 0 : i32
    %c0_i32_0 = arith.constant 0 : i32
    %c0_i32_1 = arith.constant 0 : i32
    return %arg0, %arg1, %c0_i32, %c0_i32_0 : i32, i32, i32, i32
  }
  func.func @transform_5(%arg0: i32, %arg1: i32) -> (i32, i32, i32, i32) {
    %c0_i32 = arith.constant 0 : i32
    %c0_i32_0 = arith.constant 0 : i32
    %c0_i32_1 = arith.constant 0 : i32
    return %arg0, %arg1, %c0_i32, %c0_i32_0 : i32, i32, i32, i32
  }
}

</mosaic_0001>

<bundles_post_ra>
// kernel: tpu_custom_call.1
= control target key start
LH: loop header
LB: loop body
LE: loop exit
PB: predicated region body
PF: predicated region fallthrough
CT: control target
= control target key end

     0   :  { %12 = vsyncpa [#allocation6], 0  ;;  %s537_s0 = inlined_call_operand.<no memory space> [shape: f32[1,1], index: 0, kind: input, shape index: {}]   ;;  %s538_s1 = inlined_call_operand.hbm [shape: f32[8,32], index: 1, kind: input, shape index: {}]   ;;  %s539_s2 = inlined_call_operand.hbm [shape: f32[8,32], index: 2, kind: input, shape index: {}]   ;;  %s540_s3 = inlined_call_operand.hbm [shape: f32[1,1,1], index: 3, kind: output, shape index: {0}]   ;;  %s541_s4 = inlined_call_operand.hbm [shape: f32[1,1,1,8], index: 4, kind: output, shape index: {1}]   ;;  %s542_s5 = inlined_call_operand.hbm [shape: f32[1,1,1,8], index: 5, kind: output, shape index: {2}]  }
   0x1   :  { %13 = vsyncpa [#allocation9], 0 }
   0x2   :  { %14 = vsyncpa [#allocation7], 0 }
   0x3   :  { %15 = vsyncpa [#allocation12], 0  ;;  %s421_s18 = smov [#allocation5]   ;;  %s422_s20 = smov [#allocation8]  }
   0x4   :  { %s24_s19 = sshll.u32 %s421_s18, 4  ;;  %s34_s21 = sshll.u32 %s422_s20, 4  ;;  %s25_s19 = int_to_ptr.vmem [resolvable:$true] %s24_s19  ;;  %s35_s21 = int_to_ptr.vmem [resolvable:$true] %s34_s21 }
   0x5   :  { %s303_s24 = scalar_lea.hbm %s538_s1, 128 }
   0x6   :  { %p304_p0 = scmp.ne.s32.totalorder %s538_s1, %s303_s24  ;;  %p307_p1 = scmp.lt.u32.totalorder %s303_s24, %s538_s1 }
   0x8   :  { %p309_p2 = pnand %p307_p1, %p304_p0 }
   0xa   :  { %312 = shalt.err (!%p309_p2)
}
   0xb   :  { %s313_s29 = scalar_lea.vmem %s25_s19, 128  ;;  %p318_p4 = scmp.lt.s32.totalorder %s25_s19, %s25_s19 }
   0xc   :  { %p314_p3 = scmp.ne.s32.totalorder %s25_s19, %s313_s29  ;;  %p319_p5 = scmp.lt.s32.totalorder %s313_s29, %s313_s29 }
   0xe   :  { %p320_p6 = por %p319_p5, %p318_p4 }
  0x10   :  { %p321_p7 = pnand %p320_p6, %p314_p3 }
  0x12   :  { %324 = shalt.err (!%p321_p7)
}
  0x13   :  { %27 = dma.hbm_to_vmem [thread:$0]  %s538_s1, 128, %s25_s19, [#allocation6]  }
  0x14   :  { %s325_s9 = scalar_lea.hbm %s539_s2, 128 }
  0x15   :  { %p326_p8 = scmp.ne.s32.totalorder %s539_s2, %s325_s9  ;;  %p329_p9 = scmp.lt.u32.totalorder %s325_s9, %s539_s2 }
  0x17   :  { %p331_p10 = pnand %p329_p9, %p326_p8 }
  0x19   :  { %334 = shalt.err (!%p331_p10)
}
  0x1a   :  { %s335_s14 = scalar_lea.vmem %s35_s21, 128  ;;  %p340_p12 = scmp.lt.s32.totalorder %s35_s21, %s35_s21 }
  0x1b   :  { %p336_p11 = scmp.ne.s32.totalorder %s35_s21, %s335_s14  ;;  %p341_p13 = scmp.lt.s32.totalorder %s335_s14, %s335_s14 }
  0x1d   :  { %p342_p0 = por %p341_p13, %p340_p12 }
  0x1f   :  { %p343_p1 = pnand %p342_p0, %p336_p11 }
  0x21   :  { %346 = shalt.err (!%p343_p1)
}
  0x22   :  { %37 = dma.hbm_to_vmem [thread:$0]  %s539_s2, 128, %s35_s21, [#allocation9]  }
  0x23   :  { %413 = dma.done.wait [#allocation6], 128  }
  0x24   :  { %414 = vsyncadd [#allocation6], 4294967168 }
  0x25   :  { %415 = dma.done.wait [#allocation9], 128  }
  0x26   :  { %416 = vsyncadd [#allocation9], 4294967168  ;;  %vm48_vm0 = vcmask 0   ;;  %vm50_vm1 = vcmask 7168   ;;  %v423_v0 = vmov 0.0   ;;  %vm424_vm2 = vmmov 0  }
  0x27   :  { %49 = vst.msk [vmem:[#allocation10] sm:$0x1] %vm48_vm0, %v423_v0  ;;  %276 = vmatprep.subr.mxu0 %v423_v0  ;;  %278 = vmatprep.mubr.msk.f32.mxu0 %vm424_vm2, %v423_v0  ;;  %vm55_vm3 = vcmask 261120   ;;  %v54_v1 = vld [vmem:[#allocation8] sm:$0xff]  ;;  %v53_v2 = vld [vmem:[#allocation5] sm:$0xff]  ;;  %v425_v3 = vmov -inf   ;;  %v133_v4 = vstv %s537_s0  ;;  %v184_v33 = vlaneseq }
  0x28   :  { %52 = vst.msk [vmem:[#allocation3] sm:$0xff] %vm50_vm1, %v423_v0  ;;  %277 = vmatpush3.xpose.msk.msra.mxu0 %vm55_vm3, %v54_v1  ;;  %51 = vst.msk [vmem:[#allocation2] sm:$0xff] %vm50_vm1, %v425_v3  ;;  %vm136_vm4 = vcmask 64512   ;;  %vm177_vm5 = vcmask 57344   ;;  %v426_v17 = vmov 0   ;;  %s427_s18 = smov [#allocation11]  }
  0x29   :  { %294 = vset.pattern.permute.xlu0 %v426_v17  ;;  %v185_v34 = vshrl.u32 %v184_v33, 7  ;;  %v187_v35 = vand.u32 127, %v184_v33  ;;  %s245_s19 = sshll.u32 %s427_s18, 4  ;;  %s246_s19 = int_to_ptr.vmem [resolvable:$true] %s245_s19 }
  0x2a   :  { %s347_s20 = scalar_lea.vmem %s246_s19, 16  ;;  %s351_s21 = scalar_lea.vmem %s246_s19, 32 }
  0x2b   :  { %279 = vmatmul.mubr.msk.f32.vlgmr.msra.gmra.mrb[0].mxu0 %vm55_vm3, %v53_v2  ;;  %vm188_vm6 = vcmp.eq.s32.totalorder %v185_v34, %v187_v35  ;;  %p348_p2 = scmp.ne.s32.totalorder %s246_s19, %s347_s20  ;;  %p352_p3 = scmp.lt.s32.totalorder %s246_s19, %s246_s19 }
  0x2c   :  { %p353_p4 = scmp.lt.s32.totalorder %s351_s21, %s347_s20 }
  0x2e   :  { %v200_v59 = vld [vmem:[#allocation10] sm:$0x1]  ;;  %p354_p5 = por %p353_p4, %p352_p3 }
  0x2f   :  { %v135_v26 = vld [vmem:[#allocation2] sm:$0xff]  ;;  %v144_v42 = vld [vmem:[#allocation3] sm:$0xff] }
  0x30   :  { %p355_p6 = pnand %p354_p5, %p348_p2 }
  0xfe   :  { %v128_v5 = vpop.f32.mrb[0].mxu0 }
  0xff   :  { %v134_v6 = vmul.f32 %v133_v4, %v128_v5  ;;  %v280_v7 = vpop.f32.mrb[1].mxu0 }
 0x101   :  { %v137_v8 = vsel %vm136_vm4, %v134_v6, -inf  ;;  %v189_v38 = vsel %vm188_vm6, %v134_v6, 0.0 }
 0x102   :  { %138 = vmax.xlane.f32.xlu0 %v137_v8  ;;  %v161_v9 = vrot.slane %v137_v8, 4  ;;  %v190_v39 = vsel %vm136_vm4, %v189_v38, 0.0 }
 0x104   :  { %v162_v10 = vmax.f32 %v137_v8, %v161_v9 }
 0x106   :  { %v163_v11 = vrot.slane %v162_v10, 2 }
 0x108   :  { %v164_v12 = vmax.f32 %v162_v10, %v163_v11 }
 0x10a   :  { %v165_v13 = vrot.slane %v164_v12, 1 }
 0x10c   :  { %v166_v14 = vmax.f32 %v164_v12, %v165_v13 }
 0x10e   :  { %v167_v15 = vsub.f32 %v134_v6, %v166_v14  ;;  %178 = vst.msk [vmem:[#allocation11] sm:$0x1] %vm177_vm5, %v166_v14 }
 0x110   :  { %v168_v16 = vmul.f32 1.442695, %v167_v15 }
 0x112   :  { %295 = vpow2.f32 %v168_v16 }
 0x11c   :  { %v296_v18 = vpop.eup %295 }
 0x11d   :  { %v170_v19 = vsel %vm136_vm4, %v296_v18, 0.0 }
 0x11e   :  { %v171_v20 = vrot.slane %v170_v19, 4 }
 0x120   :  { %v172_v21 = vadd.f32 %v171_v20, %v170_v19 }
 0x122   :  { %v173_v22 = vrot.slane %v172_v21, 2 }
 0x124   :  { %v174_v23 = vadd.f32 %v173_v22, %v172_v21 }
 0x126   :  { %v175_v24 = vrot.slane %v174_v23, 1 }
 0x128   :  { %v176_v25 = vadd.f32 %v175_v24, %v174_v23 }
 0x12a   :  { %179 = vst.msk [vmem:[#allocation13] sm:$0x1] %vm177_vm5, %v176_v25 }
 0x18f   :  { %v139_v27 = vpop.xlane.xlu0 %138 }
 0x190   :  { %v140_v28 = vmax.f32 %v135_v26, %v139_v27 }
 0x192   :  { %v141_v29 = vsub.f32 %v135_v26, %v140_v28  ;;  %160 = vst.msk [vmem:[#allocation2] sm:$0xff] %vm50_vm1, %v140_v28  ;;  %148 = vperm.xlu0 %294, %v140_v28  }
 0x194   :  { %v142_v40 = vmul.f32 1.442695, %v141_v29 }
 0x199   :  { %v209_v56 = vld [vmem:[#allocation2] sm:$0xff] }
 0x211   :  { %v149_v30 = vpop.permute.xlu0 %148 }
 0x212   :  { %v151_v31 = vsub.f32 %v134_v6, %v149_v30 }
 0x214   :  { %v152_v32 = vmul.f32 1.442695, %v151_v31 }
 0x216   :  { %297 = vpow2.f32 %v152_v32 }
 0x217   :  { %299 = vpow2.f32 %v142_v40 }
 0x220   :  { %v298_v36 = vpop.eup %297 }
 0x221   :  { %v154_v37 = vsel %vm136_vm4, %v298_v36, 0.0  ;;  %v300_v41 = vpop.eup %299 }
 0x222   :  { %155 = vadd.xlane.f32.xlu1 %v154_v37  ;;  %v145_v43 = vmul.f32 %v300_v41, %v144_v42 }
 0x226   :  { %191 = vadd.xlane.f32.xlu1 %v190_v39 }
 0x2af   :  { %v156_v44 = vpop.xlane.xlu1 %155 }
 0x2b0   :  { %v157_v45 = vadd.f32 %v156_v44, %v145_v43 }
 0x2b2   :  { %159 = vst.msk [vmem:[#allocation3] sm:$0xff] %vm50_vm1, %v157_v45 }
 0x2b3   :  { %v192_v46 = vpop.xlane.xlu1 %191 }
 0x2b4   :  { %v193_v47 = vrot.slane %v192_v46, 4 }
 0x2b6   :  { %v194_v48 = vadd.f32 %v193_v47, %v192_v46 }
 0x2b8   :  { %v195_v49 = vrot.slane %v194_v48, 2 }
 0x2b9   :  { %v210_v50 = vld [vmem:[#allocation3] sm:$0xff] }
 0x2ba   :  { %v196_v51 = vadd.f32 %v195_v49, %v194_v48  ;;  %301 = vlog2.f32 %v210_v50 }
 0x2bc   :  { %v197_v52 = vrot.slane %v196_v51, 1 }
 0x2be   :  { %v198_v53 = vadd.f32 %v197_v52, %v196_v51 }
 0x2c0   :  { %281 = vpush %v198_v53 }
 0x2c4   :  { %v302_v54 = vpop.eup %301 }
 0x2c5   :  { %v212_v55 = vmul.f32 0.6931472, %v302_v54 }
 0x2c7   :  { %v213_v57 = vadd.f32 %v212_v55, %v209_v56 }
 0x2c9   :  { %v215_v58 = vsel %vm50_vm1, %v213_v57, 0.0 }
 0x2ca   :  { %216 = vadd.xlane.f32.xlu1 %v215_v58 }
 0x2f1   :  { %s282_s0 = spop %281 }
 0x2f2   :  { %s201_s17 = smul.f32 2.0, %s282_s0 }
 0x2f4   :  { %v202_v60 = vstv %s201_s17 }
 0x2f5   :  { %v203_v61 = vsub.f32 %v200_v59, %v202_v60 }
 0x2f7   :  { %205 = vst.msk [vmem:[#allocation10] sm:$0x1] %vm48_vm0, %v203_v61 }
 0x2f8   :  { %358 = shalt.err (!%p355_p6)
}
 0x2f9   :  { %s359_s24 = scalar_lea.hbm %s541_s4, 16 }
 0x2fa   :  { %p360_p7 = scmp.ne.s32.totalorder %s541_s4, %s359_s24  ;;  %p363_p8 = scmp.lt.u32.totalorder %s359_s24, %s541_s4 }
 0x2fc   :  { %p365_p9 = pnand %p363_p8, %p360_p7 }
 0x2fe   :  { %368 = shalt.err (!%p365_p9)
}
 0x2ff   :  { %248 = dma.vmem_to_hbm [thread:$0]  %s246_s19, 16, %s541_s4, [#allocation12]  }
 0x300   :  { %s428_s6 = smov [#allocation13]  }
 0x301   :  { %s255_s7 = sshll.u32 %s428_s6, 4  ;;  %s256_s7 = int_to_ptr.vmem [resolvable:$true] %s255_s7 }
 0x302   :  { %s369_s8 = scalar_lea.vmem %s256_s7, 16  ;;  %s373_s9 = scalar_lea.vmem %s256_s7, 32 }
 0x303   :  { %p370_p10 = scmp.ne.s32.totalorder %s256_s7, %s369_s8  ;;  %p374_p11 = scmp.lt.s32.totalorder %s256_s7, %s256_s7 }
 0x304   :  { %p375_p12 = scmp.lt.s32.totalorder %s373_s9, %s369_s8 }
 0x306   :  { %p376_p13 = por %p375_p12, %p374_p11 }
 0x308   :  { %p377_p0 = pnand %p376_p13, %p370_p10 }
 0x30a   :  { %380 = shalt.err (!%p377_p0)
}
 0x30b   :  { %s381_s12 = scalar_lea.hbm %s542_s5, 16 }
 0x30c   :  { %p382_p1 = scmp.ne.s32.totalorder %s542_s5, %s381_s12  ;;  %p385_p2 = scmp.lt.u32.totalorder %s381_s12, %s542_s5 }
 0x30e   :  { %p387_p3 = pnand %p385_p2, %p382_p1 }
 0x310   :  { %390 = shalt.err (!%p387_p3)
}
 0x311   :  { %258 = dma.vmem_to_hbm [thread:$0]  %s256_s7, 16, %s542_s5, [#allocation12]   ;;  %v214_v5 = vld [vmem:[#allocation10] sm:$0x1] }
 0x312   :  { %s429_s16 = smov [#allocation10]  }
 0x313   :  { %s235_s0 = sshll.u32 %s429_s16, 4  ;;  %s236_s0 = int_to_ptr.vmem [resolvable:$true] %s235_s0 }
 0x314   :  { %s391_s18 = scalar_lea.vmem %s236_s0, 16  ;;  %s395_s5 = scalar_lea.vmem %s236_s0, 32 }
 0x315   :  { %p392_p4 = scmp.ne.s32.totalorder %s236_s0, %s391_s18  ;;  %p396_p5 = scmp.lt.s32.totalorder %s236_s0, %s236_s0 }
 0x316   :  { %p397_p6 = scmp.lt.s32.totalorder %s395_s5, %s391_s18 }
 0x318   :  { %p398_p7 = por %p397_p6, %p396_p5 }
 0x31a   :  { %p399_p8 = pnand %p398_p7, %p392_p4 }
 0x357   :  { %v217_v62 = vpop.xlane.xlu1 %216 }
 0x358   :  { %v218_v63 = vrot.slane %v217_v62, 4 }
 0x35a   :  { %v219_v0 = vadd.f32 %v218_v63, %v217_v62 }
 0x35c   :  { %v220_v1 = vrot.slane %v219_v0, 2 }
 0x35e   :  { %v221_v2 = vadd.f32 %v220_v1, %v219_v0 }
 0x360   :  { %v222_v3 = vrot.slane %v221_v2, 1 }
 0x362   :  { %v223_v4 = vadd.f32 %v222_v3, %v221_v2 }
 0x364   :  { %283 = vpush %v223_v4 }
 0x395   :  { %s284_s17 = spop %283 }
 0x396   :  { %v225_v6 = vstv %s284_s17 }
 0x397   :  { %v226_v7 = vadd.f32 %v225_v6, %v214_v5 }
 0x399   :  { %228 = vst.msk [vmem:[#allocation10] sm:$0x1] %vm48_vm0, %v226_v7 }
 0x39a   :  { %402 = shalt.err (!%p399_p8)
}
 0x39b   :  { %s403_s21 = scalar_lea.hbm %s540_s3, 16 }
 0x39c   :  { %p404_p9 = scmp.ne.s32.totalorder %s540_s3, %s403_s21  ;;  %p407_p10 = scmp.lt.u32.totalorder %s403_s21, %s540_s3 }
 0x39e   :  { %p409_p11 = pnand %p407_p10, %p404_p9 }
 0x3a0   :  { %412 = shalt.err (!%p409_p11)
}
 0x3a1   :  { %238 = dma.vmem_to_hbm [thread:$0]  %s236_s0, 16, %s540_s3, [#allocation7]  }
 0x3a2   :  { %417 = dma.done.wait [#allocation7], 16  }
 0x3a3   :  { %418 = vsyncadd [#allocation7], 4294967280 }
 0x3a4   :  { %419 = dma.done.wait [#allocation12], 32  }
 0x3a5   :  { %420 = vsyncadd [#allocation12], 4294967264 }
 0x3a6   :  { %268 = vsyncpa [#allocation6], 1 }
 0x3a7   :  { %269 = vsyncpa [#allocation9], 1 }
 0x3a8   :  { %270 = vsyncpa [#allocation7], 1 }
 0x3a9   :  { %271 = vsyncpa [#allocation12], 1 }

</bundles_post_ra>
